<compile_context>
chip_gen: v7x
topology: tpu7x:2x2x1
jax: 0.10.0
libtpu: 0.0.40
codegen_flags: <defaults>
</compile_context>

<pallas_src>
import jax
import jax.numpy as jnp
from jax.experimental import pallas as pl
from jax.experimental.pallas import tpu as pltpu

NOUT = 4         # real output width of fc3
NOUT_PAD = 128   # lane-dense padded output width


def mlp_kernel(x_ref, w1_ref, b1_ref, w2_ref, b2_ref, w3_ref, b3_ref, o_ref):
    # fc1 + relu  (bf16 operands, f32 accumulation / epilogue)
    h1 = jnp.dot(x_ref[...], w1_ref[...], preferred_element_type=jnp.float32)
    h1 = jnp.maximum(h1 + b1_ref[...], 0.0)
    # fc2 + relu
    h2 = jnp.dot(h1.astype(jnp.bfloat16), w2_ref[...], preferred_element_type=jnp.float32)
    h2 = jnp.maximum(h2 + b2_ref[...], 0.0)
    # fc3 (no activation); output block is lane-dense (tile_m, 128)
    h3 = jnp.dot(h2.astype(jnp.bfloat16), w3_ref[...], preferred_element_type=jnp.float32)
    o_ref[...] = (h3 + b3_ref[...]).astype(o_ref.dtype)


def _round_up(x, m):
    return ((x + m - 1) // m) * m


def net_forward(x, params, *, tm=2048):
    """Forward pass. x: (batch, 7) f32. Returns (batch, 4) f32."""
    w1, b1, w2, b2, w3, b3 = params
    batch, fin = x.shape

    # bf16 inputs / weights (MXU native rate); biases stay f32.
    xb = x.astype(jnp.bfloat16)
    w1b = w1.astype(jnp.bfloat16)
    w2b = w2.astype(jnp.bfloat16)
    # Zero-pad fc3 to 128 output columns -> lane-dense output stores.
    w3b = jnp.zeros((w3.shape[0], NOUT_PAD), jnp.bfloat16).at[:, :NOUT].set(
        w3.astype(jnp.bfloat16))
    b3p = jnp.zeros((1, NOUT_PAD), jnp.float32).at[:, :NOUT].set(b3)

    # Batch tile: multiple of 16 (bf16 sublane packing), capped at tm.
    tile_m = min(tm, _round_up(batch, 16))
    grid = (pl.cdiv(batch, tile_m),)  # ragged last block handled by Pallas masking

    def resident(arr):
        # Whole-array block with a constant index_map: stays resident in VMEM across
        # grid steps (same block index every step -> no re-DMA).
        return pl.BlockSpec(arr.shape, lambda i: (0, 0))

    flops = 2 * batch * (7 * 64 + 64 * 128 + 128 * NOUT)
    bytes_accessed = (
        batch * fin * 2                      # x read (bf16)
        + batch * NOUT_PAD * 4               # padded output write (f32)
        + (7 * 64 + 64 * 128 + 128 * NOUT_PAD) * 2   # weights (bf16)
        + (64 + 128 + NOUT_PAD) * 4          # biases (f32)
    )

    out = pl.pallas_call(
        mlp_kernel,
        out_shape=jax.ShapeDtypeStruct((batch, NOUT_PAD), jnp.float32),
        grid=grid,
        in_specs=[
            pl.BlockSpec((tile_m, fin), lambda i: (i, 0)),  # x streams one batch tile per step
            resident(w1b), resident(b1),
            resident(w2b), resident(b2),
            resident(w3b), resident(b3p),
        ],
        out_specs=pl.BlockSpec((tile_m, NOUT_PAD), lambda i: (i, 0)),
        compiler_params=pltpu.CompilerParams(
            dimension_semantics=("parallel",),   # batch tiles are independent
            vmem_limit_bytes=32 * 1024 * 1024,   # > v5e's 16 MiB default; safe on v7x (64 MiB phys)
        ),
        cost_estimate=pl.CostEstimate(
            flops=flops, transcendentals=0, bytes_accessed=bytes_accessed),
    )(xb, w1b, b1, w2b, b2, w3b, b3p)
    return out[:, :NOUT]


def init_params(key):
    # Deterministic init mimicking torch.nn.Linear default: U(-1/sqrt(fan_in), 1/sqrt(fan_in)).
    def linear(key, fan_in, fan_out):
        kw, kb = jax.random.split(key)
        bound = 1.0 / jnp.sqrt(fan_in)
        w = jax.random.uniform(kw, (fan_in, fan_out), jnp.float32, -bound, bound)
        b = jax.random.uniform(kb, (1, fan_out), jnp.float32, -bound, bound)
        return w, b

    k1, k2, k3 = jax.random.split(key, 3)
    w1, b1 = linear(k1, 7, 64)
    w2, b2 = linear(k2, 64, 128)
    w3, b3 = linear(k3, 128, 4)
    return (w1, b1, w2, b2, w3, b3)


def reference_bf16(x, params):
    # Same mixed precision as the kernel (bf16 operands, f32 accumulation/epilogue).
    w1, b1, w2, b2, w3, b3 = params
    h = jnp.dot(x.astype(jnp.bfloat16), w1.astype(jnp.bfloat16),
                preferred_element_type=jnp.float32)
    h = jnp.maximum(h + b1, 0.0)
    h = jnp.dot(h.astype(jnp.bfloat16), w2.astype(jnp.bfloat16),
                preferred_element_type=jnp.float32)
    h = jnp.maximum(h + b2, 0.0)
    return jnp.dot(h.astype(jnp.bfloat16), w3.astype(jnp.bfloat16),
                   preferred_element_type=jnp.float32) + b3


def reference_f32(x, params):
    w1, b1, w2, b2, w3, b3 = params
    h = jnp.maximum(x @ w1 + b1, 0.0)
    h = jnp.maximum(h @ w2 + b2, 0.0)
    return h @ w3 + b3


if __name__ == "__main__":
    key = jax.random.PRNGKey(0)
    kx, kp, kx2 = jax.random.split(key, 3)
    params = init_params(kp)

    # Small batch (matches the original test shape).
    batch = 8
    x = jax.random.normal(kx, (batch, 7), dtype=jnp.float32)
    out = net_forward(x, params)
    jax.block_until_ready(out)
    assert out.shape == (batch, NOUT)
    assert jnp.allclose(out, reference_bf16(x, params), atol=2e-3, rtol=2e-3)
    assert jnp.allclose(out, reference_f32(x, params), atol=5e-2, rtol=5e-2)

    # Larger, non-tile-multiple batch -> multi-step grid with a ragged last block.
    batch2 = 5000
    x2 = jax.random.normal(kx2, (batch2, 7), dtype=jnp.float32)
    out2 = net_forward(x2, params)
    jax.block_until_ready(out2)
    assert out2.shape == (batch2, NOUT)
    assert jnp.allclose(out2, reference_bf16(x2, params), atol=2e-3, rtol=2e-3)
    assert jnp.allclose(out2, reference_f32(x2, params), atol=5e-2, rtol=5e-2)

    print("KERNEL_OK")
</pallas_src>

<mosaic_0001>
module attributes {stable_mosaic.version = 11 : i64} {
  func.func @mlp_kernel(%arg0: i32, %arg1: memref<16x7xbf16, #tpu.memory_space<vmem>>, %arg2: memref<7x64xbf16, #tpu.memory_space<vmem>>, %arg3: memref<1x64xf32, #tpu.memory_space<vmem>>, %arg4: memref<64x128xbf16, #tpu.memory_space<vmem>>, %arg5: memref<1x128xf32, #tpu.memory_space<vmem>>, %arg6: memref<128x128xbf16, #tpu.memory_space<vmem>>, %arg7: memref<1x128xf32, #tpu.memory_space<vmem>>, %arg8: memref<16x128xf32, #tpu.memory_space<vmem>>) attributes {dimension_semantics = [#tpu.dimension_semantics<parallel>], iteration_bounds = array<i64: 1>, scalar_prefetch = 0 : i64, scratch_operands = 0 : i64, tpu.core_type = #tpu.core_type<tc>, window_params = [{transform_indices = @transform_0, window_bounds = array<i64: 16, 7>}, {pipeline_mode = #tpu.pipeline_mode<synchronous>, transform_indices = @transform_1, window_bounds = array<i64: 7, 64>}, {pipeline_mode = #tpu.pipeline_mode<synchronous>, transform_indices = @transform_2, window_bounds = array<i64: 1, 64>}, {pipeline_mode = #tpu.pipeline_mode<synchronous>, transform_indices = @transform_3, window_bounds = array<i64: 64, 128>}, {pipeline_mode = #tpu.pipeline_mode<synchronous>, transform_indices = @transform_4, window_bounds = array<i64: 1, 128>}, {pipeline_mode = #tpu.pipeline_mode<synchronous>, transform_indices = @transform_5, window_bounds = array<i64: 128, 128>}, {pipeline_mode = #tpu.pipeline_mode<synchronous>, transform_indices = @transform_6, window_bounds = array<i64: 1, 128>}, {transform_indices = @transform_7, window_bounds = array<i64: 16, 128>}]} {
    %c0 = arith.constant 0 : index
    %c0_0 = arith.constant 0 : index
    %0 = vector.load %arg1[%c0, %c0_0] : memref<16x7xbf16, #tpu.memory_space<vmem>>, vector<16x7xbf16>
    %c0_1 = arith.constant 0 : index
    %c0_2 = arith.constant 0 : index
    %1 = vector.load %arg2[%c0_1, %c0_2] : memref<7x64xbf16, #tpu.memory_space<vmem>>, vector<7x64xbf16>
    %cst = arith.constant dense<0.000000e+00> : vector<16x64xf32>
    %2 = tpu.matmul %0, %1, %cst {dimension_numbers = #tpu.dot_dimension_numbers<[1], [0], [0], [1], [0, 0, 1, 1], [], []>} : vector<16x7xbf16>, vector<7x64xbf16>, vector<16x64xf32> -> vector<16x64xf32>
    %c0_3 = arith.constant 0 : index
    %c0_4 = arith.constant 0 : index
    %3 = vector.load %arg3[%c0_3, %c0_4] : memref<1x64xf32, #tpu.memory_space<vmem>>, vector<1x64xf32>
    %4 = vector.broadcast %3 : vector<1x64xf32> to vector<16x64xf32>
    %5 = arith.addf %2, %4 : vector<16x64xf32>
    %cst_5 = arith.constant 0.000000e+00 : f32
    %6 = vector.broadcast %cst_5 : f32 to vector<16x64xf32>
    %7 = arith.maximumf %5, %6 : vector<16x64xf32>
    %8 = arith.truncf %7 : vector<16x64xf32> to vector<16x64xbf16>
    %c0_6 = arith.constant 0 : index
    %c0_7 = arith.constant 0 : index
    %9 = vector.load %arg4[%c0_6, %c0_7] : memref<64x128xbf16, #tpu.memory_space<vmem>>, vector<64x128xbf16>
    %cst_8 = arith.constant dense<0.000000e+00> : vector<16x128xf32>
    %10 = tpu.matmul %8, %9, %cst_8 {dimension_numbers = #tpu.dot_dimension_numbers<[1], [0], [0], [1], [0, 0, 1, 1], [], []>} : vector<16x64xbf16>, vector<64x128xbf16>, vector<16x128xf32> -> vector<16x128xf32>
    %c0_9 = arith.constant 0 : index
    %c0_10 = arith.constant 0 : index
    %11 = vector.load %arg5[%c0_9, %c0_10] : memref<1x128xf32, #tpu.memory_space<vmem>>, vector<1x128xf32>
    %12 = vector.broadcast %11 : vector<1x128xf32> to vector<16x128xf32>
    %13 = arith.addf %10, %12 : vector<16x128xf32>
    %cst_11 = arith.constant 0.000000e+00 : f32
    %14 = vector.broadcast %cst_11 : f32 to vector<16x128xf32>
    %15 = arith.maximumf %13, %14 : vector<16x128xf32>
    %16 = arith.truncf %15 : vector<16x128xf32> to vector<16x128xbf16>
    %c0_12 = arith.constant 0 : index
    %c0_13 = arith.constant 0 : index
    %17 = vector.load %arg6[%c0_12, %c0_13] : memref<128x128xbf16, #tpu.memory_space<vmem>>, vector<128x128xbf16>
    %cst_14 = arith.constant dense<0.000000e+00> : vector<16x128xf32>
    %18 = tpu.matmul %16, %17, %cst_14 {dimension_numbers = #tpu.dot_dimension_numbers<[1], [0], [0], [1], [0, 0, 1, 1], [], []>} : vector<16x128xbf16>, vector<128x128xbf16>, vector<16x128xf32> -> vector<16x128xf32>
    %c0_15 = arith.constant 0 : index
    %c0_16 = arith.constant 0 : index
    %19 = vector.load %arg7[%c0_15, %c0_16] : memref<1x128xf32, #tpu.memory_space<vmem>>, vector<1x128xf32>
    %20 = vector.broadcast %19 : vector<1x128xf32> to vector<16x128xf32>
    %21 = arith.addf %18, %20 : vector<16x128xf32>
    %c0_17 = arith.constant 0 : index
    %c0_18 = arith.constant 0 : index
    %22 = vector.load %arg8[%c0_17, %c0_18] : memref<16x128xf32, #tpu.memory_space<vmem>>, vector<16x128xf32>
    tpu.vector_store %arg8[%c0_17, %c0_18], %21 {strides = array<i32>} : memref<16x128xf32, #tpu.memory_space<vmem>>, vector<16x128xf32>,
    return
  }
  func.func @transform_0(%arg0: i32) -> (i32, i32) {
    %c0_i32 = arith.constant 0 : i32
    %c0_i32_0 = arith.constant 0 : i32
    return %arg0, %c0_i32 : i32, i32
  }
  func.func @transform_1(%arg0: i32) -> (i32, i32) {
    %c0_i32 = arith.constant 0 : i32
    %c0_i32_0 = arith.constant 0 : i32
    %c0_i32_1 = arith.constant 0 : i32
    return %c0_i32, %c0_i32_0 : i32, i32
  }
  func.func @transform_2(%arg0: i32) -> (i32, i32) {
    %c0_i32 = arith.constant 0 : i32
    %c0_i32_0 = arith.constant 0 : i32
    %c0_i32_1 = arith.constant 0 : i32
    return %c0_i32, %c0_i32_0 : i32, i32
  }
  func.func @transform_3(%arg0: i32) -> (i32, i32) {
    %c0_i32 = arith.constant 0 : i32
    %c0_i32_0 = arith.constant 0 : i32
    %c0_i32_1 = arith.constant 0 : i32
    return %c0_i32, %c0_i32_0 : i32, i32
  }
  func.func @transform_4(%arg0: i32) -> (i32, i32) {
    %c0_i32 = arith.constant 0 : i32
    %c0_i32_0 = arith.constant 0 : i32
    %c0_i32_1 = arith.constant 0 : i32
    return %c0_i32, %c0_i32_0 : i32, i32
  }
  func.func @transform_5(%arg0: i32) -> (i32, i32) {
    %c0_i32 = arith.constant 0 : i32
    %c0_i32_0 = arith.constant 0 : i32
    %c0_i32_1 = arith.constant 0 : i32
    return %c0_i32, %c0_i32_0 : i32, i32
  }
  func.func @transform_6(%arg0: i32) -> (i32, i32) {
    %c0_i32 = arith.constant 0 : i32
    %c0_i32_0 = arith.constant 0 : i32
    %c0_i32_1 = arith.constant 0 : i32
    return %c0_i32, %c0_i32_0 : i32, i32
  }
  func.func @transform_7(%arg0: i32) -> (i32, i32) {
    %c0_i32 = arith.constant 0 : i32
    %c0_i32_0 = arith.constant 0 : i32
    return %arg0, %c0_i32 : i32, i32
  }
}

</mosaic_0001>

<bundles_post_ra>
// kernel: tpu_custom_call.1
= control target key start
LH: loop header
LB: loop body
LE: loop exit
PB: predicated region body
PF: predicated region fallthrough
CT: control target
= control target key end

     0   :  { %12 = vsyncpa [#allocation3], 0  ;;  %s731_s0 = inlined_call_operand.hbm [shape: bf16[8,7], index: 0, kind: input, shape index: {}]   ;;  %s732_s1 = inlined_call_operand.hbm [shape: bf16[7,64], index: 1, kind: input, shape index: {}]   ;;  %s733_s2 = inlined_call_operand.vmem [shape: f32[1,64], index: 2, kind: input, shape index: {}]   ;;  %s734_s3 = inlined_call_operand.hbm [shape: bf16[64,128], index: 3, kind: input, shape index: {}]   ;;  %s735_s4 = inlined_call_operand.vmem [shape: f32[1,128], index: 4, kind: input, shape index: {}]   ;;  %s736_s5 = inlined_call_operand.hbm [shape: bf16[128,128], index: 5, kind: input, shape index: {}]   ;;  %s737_s6 = inlined_call_operand.vmem [shape: f32[1,128], index: 6, kind: input, shape index: {}]   ;;  %s738_s7 = inlined_call_operand.hbm [shape: f32[8,128], index: 7, kind: output, shape index: {}]  }
   0x1   :  { %13 = vsyncpa [#allocation6], 0 }
   0x2   :  { %14 = vsyncpa [#allocation9], 0 }
   0x3   :  { %15 = vsyncpa [#allocation4], 0 }
   0x4   :  { %20 = vsyncadd [#allocation3], 64  ;;  %s586_s24 = smov [#allocation5]   ;;  %s587_s26 = smov [#allocation2]  }
   0x5   :  { %s34_s25 = sshll.u32 %s586_s24, 4  ;;  %s21_s27 = sshll.u32 %s587_s26, 4  ;;  %s35_s25 = int_to_ptr.vmem [resolvable:$true] %s34_s25  ;;  %s638_s27 = int_to_ptr.vmem [resolvable:$true] %s21_s27 }
   0x6   :  { %s468_s30 = scalar_lea.hbm %s732_s1, 64 }
   0x7   :  { %p469_p0 = scmp.ne.s32.totalorder %s732_s1, %s468_s30  ;;  %p472_p1 = scmp.lt.u32.totalorder %s468_s30, %s732_s1 }
   0x9   :  { %p474_p2 = pnand %p472_p1, %p469_p0 }
   0xb   :  { %477 = shalt.err (!%p474_p2)
}
   0xc   :  { %s478_s12 = scalar_lea.vmem %s35_s25, 64  ;;  %p483_p4 = scmp.lt.s32.totalorder %s35_s25, %s35_s25 }
   0xd   :  { %p479_p3 = scmp.ne.s32.totalorder %s35_s25, %s478_s12  ;;  %p484_p5 = scmp.lt.s32.totalorder %s478_s12, %s478_s12 }
   0xf   :  { %p485_p6 = por %p484_p5, %p483_p4 }
  0x11   :  { %p486_p7 = pnand %p485_p6, %p479_p3 }
  0x13   :  { %489 = shalt.err (!%p486_p7)
}
  0x14   :  { %37 = dma.hbm_to_vmem [thread:$0]  %s732_s1, 64, %s35_s25, [#allocation6]  }
  0x15   :  { %s490_s17 = scalar_lea.hbm %s731_s0, 64 }
  0x16   :  { %p491_p8 = scmp.ne.s32.totalorder %s731_s0, %s490_s17  ;;  %p494_p9 = scmp.lt.u32.totalorder %s490_s17, %s731_s0 }
  0x18   :  { %p496_p10 = pnand %p494_p9, %p491_p8 }
  0x1a   :  { %499 = shalt.err (!%p496_p10)
}
  0x1b   :  { %s500_s22 = scalar_lea.vmem %s638_s27, 64  ;;  %s504_s1 = scalar_lea.vmem %s638_s27, 128 }
  0x1c   :  { %p501_p11 = scmp.ne.s32.totalorder %s638_s27, %s500_s22  ;;  %p505_p12 = scmp.lt.s32.totalorder %s638_s27, %s638_s27 }
  0x1d   :  { %p506_p13 = scmp.lt.s32.totalorder %s504_s1, %s500_s22 }
  0x1f   :  { %p507_p0 = por %p506_p13, %p505_p12 }
  0x21   :  { %p508_p1 = pnand %p507_p0, %p501_p11 }
  0x23   :  { %511 = shalt.err (!%p508_p1)
}
  0x24   :  { %s588_s23 = smov 64   ;;  %s589_s24 = smov 4  }
  0x25   :  { %27 = dma.hbm_to_vmem [thread:$0]  %s731_s0, 64, %s638_s27, [#allocation3], %s588_s23, %s588_s23, %s589_s24  }
  0x26   :  { %s590_s28 = smov [#allocation7]   ;;  %s591_s30 = smov [#allocation8]  }
  0x27   :  { %s45_s29 = sshll.u32 %s590_s28, 4  ;;  %s59_s8 = sshll.u32 %s591_s30, 4  ;;  %s46_s29 = int_to_ptr.vmem [resolvable:$true] %s45_s29  ;;  %s673_s8 = int_to_ptr.vmem [resolvable:$true] %s59_s8 }
  0x28   :  { %s512_s11 = scalar_lea.hbm %s734_s3, 512 }
  0x29   :  { %p513_p2 = scmp.ne.s32.totalorder %s734_s3, %s512_s11  ;;  %p516_p3 = scmp.lt.u32.totalorder %s512_s11, %s734_s3 }
  0x2b   :  { %p518_p4 = pnand %p516_p3, %p513_p2 }
  0x2d   :  { %521 = shalt.err (!%p518_p4)
}
  0x2e   :  { %s522_s0 = scalar_lea.vmem %s46_s29, 512  ;;  %p527_p6 = scmp.lt.s32.totalorder %s46_s29, %s46_s29 }
  0x2f   :  { %p523_p5 = scmp.ne.s32.totalorder %s46_s29, %s522_s0  ;;  %p528_p7 = scmp.lt.s32.totalorder %s522_s0, %s522_s0 }
  0x31   :  { %p529_p8 = por %p528_p7, %p527_p6 }
  0x33   :  { %p530_p9 = pnand %p529_p8, %p523_p5 }
  0x35   :  { %533 = shalt.err (!%p530_p9)
}
  0x36   :  { %51 = dma.hbm_to_vmem [thread:$0]  %s734_s3, 512, %s46_s29, [#allocation6], %s588_s23, %s588_s23, %s589_s24  }
  0x37   :  { %s534_s19 = scalar_lea.hbm %s736_s5, 1024 }
  0x38   :  { %p535_p10 = scmp.ne.s32.totalorder %s736_s5, %s534_s19  ;;  %p538_p11 = scmp.lt.u32.totalorder %s534_s19, %s736_s5 }
  0x3a   :  { %p540_p12 = pnand %p538_p11, %p535_p10 }
  0x3c   :  { %543 = shalt.err (!%p540_p12)
}
  0x3d   :  { %s544_s25 = scalar_lea.vmem %s673_s8, 1024  ;;  %p549_p0 = scmp.lt.s32.totalorder %s673_s8, %s673_s8 }
  0x3e   :  { %p545_p13 = scmp.ne.s32.totalorder %s673_s8, %s544_s25  ;;  %p550_p1 = scmp.lt.s32.totalorder %s544_s25, %s544_s25 }
  0x40   :  { %p551_p2 = por %p550_p1, %p549_p0 }
  0x42   :  { %p552_p3 = pnand %p551_p2, %p545_p13 }
  0x44   :  { %555 = shalt.err (!%p552_p3)
}
  0x45   :  { %65 = dma.hbm_to_vmem [thread:$0]  %s736_s5, 1024, %s673_s8, [#allocation9], %s588_s23, %s588_s23, %s589_s24  }
  0x46   :  { %578 = dma.done.wait [#allocation3], 128  }
  0x47   :  { %579 = vsyncadd [#allocation3], 4294967168 }
  0x48   :  { %580 = dma.done.wait [#allocation6], 576  }
  0x49   :  { %581 = vsyncadd [#allocation6], 4294966720 }
  0x4a   :  { %582 = dma.done.wait [#allocation9], 1024  }
  0x4b   :  { %583 = vsyncadd [#allocation9], 4294966272  ;;  %vm100_vm0 = vcmask 1042432   ;;  %v592_v0 = vmov 0.0   ;;  %vm101_vm1 = vcmask 1043456   ;;  %v593_v1 = vmov 65535  }
  0x4c   :  { %405 = vmatprep.subr.bf16.mxu1 %v592_v0  ;;  %423 = vmatprep.subr.bf16.mxu0 %v592_v0  ;;  %v102_v2 = vsel %vm100_vm0, 4294967295, %v593_v1  ;;  %vm594_vm2 = vmmov 0   ;;  %v83_v4 = vld [vmem:[#allocation5] sm:$0xf]  ;;  %v455_v6 = vld [vmem:[#allocation2] sm:$0xff]   ;;  %vm96_vm3 = vcmask 56320  }
  0x4d   :  { %407 = vmatprep.mubr.msk.bf16.mxu1 %vm594_vm2, %v592_v0  ;;  %439 = vmatprep.mubr.msk.bf16.mxu0 %vm594_vm2, %v592_v0  ;;  %v103_v3 = vsel %vm101_vm1, %v102_v2, 0  ;;  %v456_v7 = vld [vmem:[#allocation7] sm:$0xff]   ;;  %v457_v8 = vld [vmem:[#allocation7 + $0x8] sm:$0xff]   ;;  %v458_v9 = vld [vmem:[#allocation7 + $0x10] sm:$0xff]   ;;  %vm190_vm4 = vcmask 523264  }
  0x4e   :  { %v105_v5 = vand.u32 %v103_v3, %v83_v4  ;;  %v459_v10 = vld [vmem:[#allocation7 + $0x18] sm:$0xff]   ;;  %v460_v11 = vld [vmem:[#allocation8] sm:$0xff]   ;;  %v461_v12 = vld [vmem:[#allocation8 + $0x8] sm:$0xff]  }
  0x4f   :  { %424 = vmatpush3.bf16.msra.mxu0 %v460_v11  ;;  %v462_v13 = vld [vmem:[#allocation8 + $0x10] sm:$0xff]   ;;  %v463_v14 = vld [vmem:[#allocation8 + $0x18] sm:$0xff]   ;;  %v464_v15 = vld [vmem:[#allocation8 + $0x20] sm:$0xff]  }
  0x50   :  { %406 = vmatpush3.bf16.msra.mxu1 %v105_v5  ;;  %425 = vmatprep.subr.bf16.mxu0 %v592_v0  ;;  %v465_v16 = vld [vmem:[#allocation8 + $0x28] sm:$0xff]   ;;  %v371_v17 = vld [vmem:[%s733_s2] ss:$0 sm:$0xff]  ;;  %v467_v28 = vld [vmem:[#allocation8 + $0x38] sm:$0xff]  }
  0x51   :  { %411 = vmatprep.subr.bf16.mxu1 %v592_v0  ;;  %v466_v27 = vld [vmem:[#allocation8 + $0x30] sm:$0xff]  }
  0x52   :  { %v374_v29 = vld [vmem:[%s735_s4] ss:$0 sm:$0xff] }
  0x53   :  { %408 = vmatmul.mubr.msk.bf16.vlgmr.msra.gmra.mrb[0].mxu1 %vm96_vm3, %v455_v6  ;;  %426 = vmatpush3.bf16.msra.mxu0 %v461_v12  ;;  %v380_v39 = vld [vmem:[%s737_s6] ss:$0 sm:$0xff] }
  0x54   :  { %412 = vmatpush3.bf16.msra.mxu1 %v456_v7  ;;  %419 = vmatprep.mubr.msk.bf16.mxu1 %vm594_vm2, %v592_v0 }
  0x55   :  { %413 = vmatprep.subr.bf16.mxu1 %v592_v0  ;;  %427 = vmatprep.subr.bf16.mxu0 %v592_v0 }
  0x57   :  { %428 = vmatpush3.bf16.msra.mxu0 %v462_v13 }
  0x58   :  { %414 = vmatpush3.bf16.msra.mxu1 %v457_v8  ;;  %429 = vmatprep.subr.bf16.mxu0 %v592_v0 }
  0x59   :  { %415 = vmatprep.subr.bf16.mxu1 %v592_v0 }
  0x5b   :  { %430 = vmatpush3.bf16.msra.mxu0 %v463_v14 }
  0x5c   :  { %416 = vmatpush3.bf16.msra.mxu1 %v458_v9  ;;  %431 = vmatprep.subr.bf16.mxu0 %v592_v0 }
  0x5d   :  { %417 = vmatprep.subr.bf16.mxu1 %v592_v0 }
  0x5f   :  { %432 = vmatpush3.bf16.msra.mxu0 %v464_v15 }
  0x60   :  { %418 = vmatpush3.bf16.msra.mxu1 %v459_v10  ;;  %433 = vmatprep.subr.bf16.mxu0 %v592_v0 }
  0x63   :  { %434 = vmatpush3.bf16.msra.mxu0 %v465_v16 }
  0x64   :  { %435 = vmatprep.subr.bf16.mxu0 %v592_v0 }
  0x67   :  { %436 = vmatpush3.bf16.msra.mxu0 %v466_v27 }
  0x68   :  { %437 = vmatprep.subr.bf16.mxu0 %v592_v0 }
  0x6b   :  { %438 = vmatpush3.bf16.msra.mxu0 %v467_v28 }
 0x126   :  { %v141_v18 = vpop.f32.mrb[0].mxu1 }
 0x127   :  { %v142_v19 = vadd.f32 %v371_v17, %v141_v18  ;;  %v409_v20 = vpop.f32.mrb[1].mxu1 }
 0x128   :  { %v144_v21 = vpop.f32.mrb[2].mxu1 }
 0x129   :  { %v145_v22 = vadd.f32 %v371_v17, %v144_v21  ;;  %v410_v23 = vpop.f32.mrb[3].mxu1  ;;  %v148_v24 = vmax.f32 %v142_v19, 0.0 }
 0x12b   :  { %v149_v25 = vmax.f32 %v145_v22, 0.0 }
 0x12d   :  { %v150_v26 = vpack.c.bf16 %v149_v25, %v148_v24 }
 0x12f   :  { %420 = vmatmul.mubr.msk.bf16.vlgmr.msra.gmra.mrb[4].mxu1 %vm190_vm4, %v150_v26 }
 0x202   :  { %v228_v30 = vpop.f32.mrb[4].mxu1 }
 0x203   :  { %v229_v31 = vadd.f32 %v374_v29, %v228_v30  ;;  %v421_v32 = vpop.f32.mrb[5].mxu1 }
 0x204   :  { %v231_v33 = vpop.f32.mrb[6].mxu1 }
 0x205   :  { %v232_v34 = vadd.f32 %v374_v29, %v231_v33  ;;  %v422_v35 = vpop.f32.mrb[7].mxu1  ;;  %v235_v36 = vmax.f32 %v229_v31, 0.0 }
 0x207   :  { %v236_v37 = vmax.f32 %v232_v34, 0.0 }
 0x209   :  { %v237_v38 = vpack.c.bf16 %v236_v37, %v235_v36 }
 0x20b   :  { %440 = vmatmul.mubr.bf16.vlgmr.msra.gmra.mrb[0].mxu0 %v237_v38 }
 0x2de   :  { %v343_v40 = vpop.f32.mrb[0].mxu0 }
 0x2df   :  { %v344_v41 = vadd.f32 %v380_v39, %v343_v40  ;;  %v441_v42 = vpop.f32.mrb[1].mxu0 }
 0x2e0   :  { %v346_v43 = vpop.f32.mrb[2].mxu0 }
 0x2e1   :  { %350 = vst [vmem:[#allocation10] sm:$0xff] %v344_v41  ;;  %v347_v44 = vadd.f32 %v380_v39, %v346_v43  ;;  %v442_v45 = vpop.f32.mrb[3].mxu0 }
 0x2e3   :  { %351 = vst [vmem:[#allocation10 + $0x8] sm:$0xff] %v347_v44 }
 0x2e4   :  { %356 = vsyncadd [#allocation4], 128  ;;  %s595_s4 = smov [#allocation10]  }
 0x2e5   :  { %s357_s30 = sshll.u32 %s595_s4, 4  ;;  %s358_s30 = int_to_ptr.vmem [resolvable:$true] %s357_s30 }
 0x2e6   :  { %s556_s8 = scalar_lea.vmem %s358_s30, 128  ;;  %s560_s9 = scalar_lea.vmem %s358_s30, 256 }
 0x2e7   :  { %p557_p4 = scmp.ne.s32.totalorder %s358_s30, %s556_s8  ;;  %p561_p5 = scmp.lt.s32.totalorder %s358_s30, %s358_s30 }
 0x2e8   :  { %p562_p6 = scmp.lt.s32.totalorder %s560_s9, %s556_s8 }
 0x2ea   :  { %p563_p7 = por %p562_p6, %p561_p5 }
 0x2ec   :  { %p564_p8 = pnand %p563_p7, %p557_p4 }
 0x2ee   :  { %567 = shalt.err (!%p564_p8)
}
 0x2ef   :  { %s568_s11 = scalar_lea.hbm %s738_s7, 128 }
 0x2f0   :  { %p569_p9 = scmp.ne.s32.totalorder %s738_s7, %s568_s11  ;;  %p572_p10 = scmp.lt.u32.totalorder %s568_s11, %s738_s7 }
 0x2f2   :  { %p574_p11 = pnand %p572_p10, %p569_p9 }
 0x2f4   :  { %577 = shalt.err (!%p574_p11)
}
 0x2f5   :  { %s596_s0 = smov 128   ;;  %s597_s27 = smov 8  }
 0x2f6   :  { %363 = dma.vmem_to_hbm [thread:$0]  %s358_s30, 128, %s738_s7, [#allocation4], %s596_s0, %s596_s0, %s597_s27  }
 0x2f7   :  { %584 = dma.done.wait [#allocation4], 256  }
 0x2f8   :  { %585 = vsyncadd [#allocation4], 4294967040 }
 0x2f9   :  { %367 = vsyncpa [#allocation3], 1 }
 0x2fa   :  { %368 = vsyncpa [#allocation6], 1 }
 0x2fb   :  { %369 = vsyncpa [#allocation9], 1 }
 0x2fc   :  { %370 = vsyncpa [#allocation4], 1 }

</bundles_post_ra>
